<compile_context>
chip_gen: v6e
topology: v6e:2x2x1
jax: 0.10.0
libtpu: 0.0.40
codegen_flags: <defaults>
</compile_context>

<pallas_src>
import functools

import jax
import jax.numpy as jnp
from jax.experimental import pallas as pl
from jax.experimental.pallas import tpu as pltpu


def _round_up(x, m):
    return (x + m - 1) // m * m


def _mlp_policy_kernel(n_layers, obs_ref, *refs):
    """Fused feature-major MLP-policy forward for one batch tile.

    refs layout: [W_0, b_0, W_1, b_1, ..., W_{n_layers}, b_{n_layers}, mean_t]
      W_i    : (out_dim, in_dim) bf16   (torch Linear layout)
      b_i    : (out_dim, 1)      f32
      mean_t : (ac_dim, tb)      f32    (batch rows on the lane axis)
    Hidden layers 0..n_layers-1 use tanh; the final layer is linear (Identity).
    """
    n_linear = n_layers + 1
    w_refs = [refs[2 * i] for i in range(n_linear)]
    b_refs = [refs[2 * i + 1] for i in range(n_linear)]
    mean_t_ref = refs[2 * n_linear]

    # One XLU transpose: (tb, ob_dim) -> (ob_dim, tb).  Everything downstream
    # is feature-major (lanes = batch rows), so loads/activations are
    # lane-dense and the final store is unmasked.
    x = obs_ref[...].T                                        # f32 (ob_dim, tb)

    # Hidden layers: Linear -> Tanh.  bf16 matmul inputs, f32 accumulation;
    # bias add and tanh stay in f32 (important on v5e: no bf16 VPU/EUP).
    for i in range(n_layers):
        h = jnp.dot(w_refs[i][...], x.astype(jnp.bfloat16),
                    preferred_element_type=jnp.float32)       # (H, tb) f32
        x = jnp.tanh(h + b_refs[i][...])                      # (H,1) bias bcast

    # Output layer: Linear (Identity activation).
    out = jnp.dot(w_refs[n_layers][...], x.astype(jnp.bfloat16),
                  preferred_element_type=jnp.float32)          # (ac_dim, tb)
    out = out + b_refs[n_layers][...]

    # Lane-dense store; ragged last tile is masked by Pallas automatically.
    # TODO(synk): emit bf16 here if the policy-gradient consumer tolerates it
    # (halves the already-small output traffic; low priority per review).
    mean_t_ref[...] = out.astype(mean_t_ref.dtype)


def mlp_policy_forward_transposed(obs, weights, biases, *, block_rows=8192):
    """Raw kernel output: mean_t of shape (ac_dim, B), batch on the lane axis.

    obs:     (B, ob_dim) float32
    weights: list of (out_dim, in_dim) arrays (n_layers hidden + 1 output)
    biases:  list of (out_dim,) arrays
    """
    n_layers = len(weights) - 1
    B, ob_dim = obs.shape
    ac_dim = weights[-1].shape[0]

    # Batch tile:
    #  * large (default up to 8192 rows) so per-grid-step overhead amortizes;
    #  * aims for an even grid (>= 2 tiles) so the "parallel" batch axis can be
    #    split across v7x's 2 TensorCores (harmless on v5e/v6e);
    #  * multiple of 128 when tiling (it is the lane axis of the transposed
    #    output); a single full-B block is exempt from the (8,128) rule.
    tb = min(block_rows, _round_up(pl.cdiv(B, 2), 128))
    if tb >= B:
        tb = B                      # single tile, grid=(1,)
    grid = (pl.cdiv(B, tb),)        # ragged last block (no padding copy of obs)

    # bf16 weights (MXU-native inputs), f32 biases reshaped to (out, 1) so they
    # broadcast over the lane (batch) axis.
    weights_bf16 = [w.astype(jnp.bfloat16) for w in weights]
    biases_2d = [b.reshape(-1, 1).astype(jnp.float32) for b in biases]

    operands = [obs]
    in_specs = [pl.BlockSpec((tb, ob_dim), lambda i: (i, 0))]
    for w, b in zip(weights_bf16, biases_2d):
        operands += [w, b]
        # Constant index_map -> DMA'd once, VMEM-resident across batch tiles.
        in_specs += [
            pl.BlockSpec(w.shape, lambda i: (0, 0)),
            pl.BlockSpec(b.shape, lambda i: (0, 0)),
        ]

    out_specs = pl.BlockSpec((ac_dim, tb), lambda i: (0, i))
    out_shape = jax.ShapeDtypeStruct((ac_dim, B), jnp.float32)

    kernel = functools.partial(_mlp_policy_kernel, n_layers)
    mean_t = pl.pallas_call(
        kernel,
        grid=grid,
        in_specs=in_specs,
        out_specs=out_specs,
        out_shape=out_shape,
        compiler_params=pltpu.CompilerParams(
            # Shard batch tiles across TensorCores (2 TCs on v7x).
            dimension_semantics=("parallel",),
            # Modest explicit budget: tiles are <~2 MiB even at 8192 rows,
            # comfortably under v7x's 64 MiB physical VMEM.
            vmem_limit_bytes=32 * 1024 * 1024,
        ),
    )(*operands)
    return mean_t


def mlp_policy_forward(obs, weights, biases, logstd, *, block_rows=8192):
    """MLPPolicy.forward (continuous case): returns Normal parameters.

    returns: (mean (B, ac_dim) f32, std (B, ac_dim) f32)
    """
    mean_t = mlp_policy_forward_transposed(obs, weights, biases,
                                           block_rows=block_rows)
    # Small (ac_dim, B) -> (B, ac_dim) XLA transpose to match the module's
    # per-observation layout; consumers able to work feature-major should call
    # mlp_policy_forward_transposed directly and skip this pass.
    mean = mean_t.T
    # std = exp(logstd) is obs-independent: computed outside the kernel and
    # broadcast (no redundant per-row HBM writes from the kernel).
    std = jnp.broadcast_to(jnp.exp(logstd.astype(jnp.float32))[None, :], mean.shape)
    return mean, std


def init_mlp_policy_params(key, ob_dim, ac_dim, n_layers, layer_size):
    """Deterministic init mimicking torch.nn.Linear default U(-1/sqrt(fan_in), +).

    Weights are stored as (out_dim, in_dim), exactly like torch Linear.weight.
    """
    sizes = [ob_dim] + [layer_size] * n_layers + [ac_dim]
    weights, biases = [], []
    for i in range(len(sizes) - 1):
        fan_in, fan_out = sizes[i], sizes[i + 1]
        key, kw, kb = jax.random.split(key, 3)
        bound = 1.0 / jnp.sqrt(fan_in)
        w = jax.random.uniform(kw, (fan_out, fan_in), jnp.float32, -bound, bound)
        b = jax.random.uniform(kb, (fan_out,), jnp.float32, -bound, bound)
        weights.append(w)
        biases.append(b)
    logstd = jnp.zeros((ac_dim,), jnp.float32)  # nn.Parameter(torch.zeros(ac_dim))
    return weights, biases, logstd


def _reference_forward(obs, weights, biases, logstd):
    """Pure-JAX reference with the same mixed precision as the kernel
    (bf16 matmul inputs, f32 accumulation, f32 bias/tanh)."""
    x = obs.astype(jnp.float32)
    n_layers = len(weights) - 1
    for i in range(n_layers):
        h = jnp.dot(x.astype(jnp.bfloat16), weights[i].astype(jnp.bfloat16).T,
                    preferred_element_type=jnp.float32) + biases[i]
        x = jnp.tanh(h)
    mean = jnp.dot(x.astype(jnp.bfloat16), weights[-1].astype(jnp.bfloat16).T,
                   preferred_element_type=jnp.float32) + biases[-1]
    std = jnp.broadcast_to(jnp.exp(logstd)[None, :], mean.shape)
    return mean, std


if __name__ == "__main__":
    # Small shapes consistent with the module: obs dim 16, 2 hidden layers of
    # size 32, action dim 4 (continuous policy).
    ob_dim, ac_dim, n_layers, layer_size = 16, 4, 2, 32

    key = jax.random.PRNGKey(0)
    key, k_obs_small, k_obs_big, k_params = jax.random.split(key, 4)

    weights, biases, logstd = init_mlp_policy_params(
        k_params, ob_dim, ac_dim, n_layers, layer_size
    )

    # Tolerance note (intentional): kernel and reference both use bf16 matmul
    # inputs with f32 accumulation; a single bf16 rounding-boundary flip in a
    # hidden activation can move the mean by ~2e-3, so compare at 5e-3.
    ATOL = 5e-3

    # --- small batch: single full-B tile, grid=(1,) ---
    obs_small = jax.random.normal(k_obs_small, (8, ob_dim), jnp.float32)
    mean_s, std_s = mlp_policy_forward(obs_small, weights, biases, logstd)
    jax.block_until_ready((mean_s, std_s))
    ref_mean_s, ref_std_s = _reference_forward(obs_small, weights, biases, logstd)
    assert mean_s.shape == (8, ac_dim) and std_s.shape == (8, ac_dim)
    assert jnp.allclose(mean_s, ref_mean_s, atol=ATOL, rtol=ATOL), "mean mismatch (B=8)"
    assert jnp.allclose(std_s, ref_std_s, atol=1e-6, rtol=1e-6), "std mismatch (B=8)"

    # --- batch exercising the multi-tile grid + ragged (unpadded) last block ---
    # block_rows=128 -> tb=128, grid=(3,), last block has only 44 valid rows.
    obs_big = jax.random.normal(k_obs_big, (300, ob_dim), jnp.float32)
    mean_b, std_b = mlp_policy_forward(obs_big, weights, biases, logstd,
                                       block_rows=128)
    jax.block_until_ready((mean_b, std_b))
    ref_mean_b, ref_std_b = _reference_forward(obs_big, weights, biases, logstd)
    assert mean_b.shape == (300, ac_dim) and std_b.shape == (300, ac_dim)
    assert jnp.allclose(mean_b, ref_mean_b, atol=ATOL, rtol=ATOL), "mean mismatch (B=300)"
    assert jnp.allclose(std_b, ref_std_b, atol=1e-6, rtol=1e-6), "std mismatch (B=300)"

    # TODO(synk): dist.sample() in get_action is host-side RNG in the original
    # module and not part of the forward hot path; the kernel returns (mean, std).

    print("KERNEL_OK")
</pallas_src>

<mosaic_0001>
module attributes {stable_mosaic.version = 11 : i64} {
  func.func @_mlp_policy_kernel(%arg0: i32, %arg1: memref<8x16xf32, #tpu.memory_space<vmem>>, %arg2: memref<32x16xbf16, #tpu.memory_space<vmem>>, %arg3: memref<32x1xf32, #tpu.memory_space<vmem>>, %arg4: memref<32x32xbf16, #tpu.memory_space<vmem>>, %arg5: memref<32x1xf32, #tpu.memory_space<vmem>>, %arg6: memref<4x32xbf16, #tpu.memory_space<vmem>>, %arg7: memref<4x1xf32, #tpu.memory_space<vmem>>, %arg8: memref<4x8xf32, #tpu.memory_space<vmem>>) attributes {dimension_semantics = [#tpu.dimension_semantics<parallel>], iteration_bounds = array<i64: 1>, scalar_prefetch = 0 : i64, scratch_operands = 0 : i64, tpu.core_type = #tpu.core_type<tc>, window_params = [{transform_indices = @transform_0, window_bounds = array<i64: 8, 16>}, {pipeline_mode = #tpu.pipeline_mode<synchronous>, transform_indices = @transform_1, window_bounds = array<i64: 32, 16>}, {pipeline_mode = #tpu.pipeline_mode<synchronous>, transform_indices = @transform_2, window_bounds = array<i64: 32, 1>}, {pipeline_mode = #tpu.pipeline_mode<synchronous>, transform_indices = @transform_3, window_bounds = array<i64: 32, 32>}, {pipeline_mode = #tpu.pipeline_mode<synchronous>, transform_indices = @transform_4, window_bounds = array<i64: 32, 1>}, {pipeline_mode = #tpu.pipeline_mode<synchronous>, transform_indices = @transform_5, window_bounds = array<i64: 4, 32>}, {pipeline_mode = #tpu.pipeline_mode<synchronous>, transform_indices = @transform_6, window_bounds = array<i64: 4, 1>}, {transform_indices = @transform_7, window_bounds = array<i64: 4, 8>}]} {
    %c0 = arith.constant 0 : index
    %c0_0 = arith.constant 0 : index
    %0 = vector.load %arg1[%c0, %c0_0] : memref<8x16xf32, #tpu.memory_space<vmem>>, vector<8x16xf32>
    %1 = tpu.transpose %0, [1, 0] : vector<8x16xf32> -> vector<16x8xf32>
    %c0_1 = arith.constant 0 : index
    %c0_2 = arith.constant 0 : index
    %2 = vector.load %arg2[%c0_1, %c0_2] : memref<32x16xbf16, #tpu.memory_space<vmem>>, vector<32x16xbf16>
    %3 = arith.truncf %1 : vector<16x8xf32> to vector<16x8xbf16>
    %cst = arith.constant dense<0.000000e+00> : vector<32x8xf32>
    %4 = tpu.matmul %2, %3, %cst {dimension_numbers = #tpu.dot_dimension_numbers<[1], [0], [0], [1], [0, 0, 1, 1], [], []>} : vector<32x16xbf16>, vector<16x8xbf16>, vector<32x8xf32> -> vector<32x8xf32>
    %c0_3 = arith.constant 0 : index
    %c0_4 = arith.constant 0 : index
    %5 = vector.load %arg3[%c0_3, %c0_4] : memref<32x1xf32, #tpu.memory_space<vmem>>, vector<32x1xf32>
    %6 = vector.broadcast %5 : vector<32x1xf32> to vector<32x8xf32>
    %7 = arith.addf %4, %6 : vector<32x8xf32>
    %8 = math.tanh %7 : vector<32x8xf32>
    %c0_5 = arith.constant 0 : index
    %c0_6 = arith.constant 0 : index
    %9 = vector.load %arg4[%c0_5, %c0_6] : memref<32x32xbf16, #tpu.memory_space<vmem>>, vector<32x32xbf16>
    %10 = arith.truncf %8 : vector<32x8xf32> to vector<32x8xbf16>
    %cst_7 = arith.constant dense<0.000000e+00> : vector<32x8xf32>
    %11 = tpu.matmul %9, %10, %cst_7 {dimension_numbers = #tpu.dot_dimension_numbers<[1], [0], [0], [1], [0, 0, 1, 1], [], []>} : vector<32x32xbf16>, vector<32x8xbf16>, vector<32x8xf32> -> vector<32x8xf32>
    %c0_8 = arith.constant 0 : index
    %c0_9 = arith.constant 0 : index
    %12 = vector.load %arg5[%c0_8, %c0_9] : memref<32x1xf32, #tpu.memory_space<vmem>>, vector<32x1xf32>
    %13 = vector.broadcast %12 : vector<32x1xf32> to vector<32x8xf32>
    %14 = arith.addf %11, %13 : vector<32x8xf32>
    %15 = math.tanh %14 : vector<32x8xf32>
    %c0_10 = arith.constant 0 : index
    %c0_11 = arith.constant 0 : index
    %16 = vector.load %arg6[%c0_10, %c0_11] : memref<4x32xbf16, #tpu.memory_space<vmem>>, vector<4x32xbf16>
    %17 = arith.truncf %15 : vector<32x8xf32> to vector<32x8xbf16>
    %cst_12 = arith.constant dense<0.000000e+00> : vector<4x8xf32>
    %18 = tpu.matmul %16, %17, %cst_12 {dimension_numbers = #tpu.dot_dimension_numbers<[1], [0], [0], [1], [0, 0, 1, 1], [], []>} : vector<4x32xbf16>, vector<32x8xbf16>, vector<4x8xf32> -> vector<4x8xf32>
    %c0_13 = arith.constant 0 : index
    %c0_14 = arith.constant 0 : index
    %19 = vector.load %arg7[%c0_13, %c0_14] : memref<4x1xf32, #tpu.memory_space<vmem>>, vector<4x1xf32>
    %20 = vector.broadcast %19 : vector<4x1xf32> to vector<4x8xf32>
    %21 = arith.addf %18, %20 : vector<4x8xf32>
    %c0_15 = arith.constant 0 : index
    %c0_16 = arith.constant 0 : index
    %22 = vector.load %arg8[%c0_15, %c0_16] : memref<4x8xf32, #tpu.memory_space<vmem>>, vector<4x8xf32>
    tpu.vector_store %arg8[%c0_15, %c0_16], %21 {strides = array<i32>} : memref<4x8xf32, #tpu.memory_space<vmem>>, vector<4x8xf32>,
    return
  }
  func.func @transform_0(%arg0: i32) -> (i32, i32) {
    %c0_i32 = arith.constant 0 : i32
    %c0_i32_0 = arith.constant 0 : i32
    return %arg0, %c0_i32 : i32, i32
  }
  func.func @transform_1(%arg0: i32) -> (i32, i32) {
    %c0_i32 = arith.constant 0 : i32
    %c0_i32_0 = arith.constant 0 : i32
    %c0_i32_1 = arith.constant 0 : i32
    return %c0_i32, %c0_i32_0 : i32, i32
  }
  func.func @transform_2(%arg0: i32) -> (i32, i32) {
    %c0_i32 = arith.constant 0 : i32
    %c0_i32_0 = arith.constant 0 : i32
    %c0_i32_1 = arith.constant 0 : i32
    return %c0_i32, %c0_i32_0 : i32, i32
  }
  func.func @transform_3(%arg0: i32) -> (i32, i32) {
    %c0_i32 = arith.constant 0 : i32
    %c0_i32_0 = arith.constant 0 : i32
    %c0_i32_1 = arith.constant 0 : i32
    return %c0_i32, %c0_i32_0 : i32, i32
  }
  func.func @transform_4(%arg0: i32) -> (i32, i32) {
    %c0_i32 = arith.constant 0 : i32
    %c0_i32_0 = arith.constant 0 : i32
    %c0_i32_1 = arith.constant 0 : i32
    return %c0_i32, %c0_i32_0 : i32, i32
  }
  func.func @transform_5(%arg0: i32) -> (i32, i32) {
    %c0_i32 = arith.constant 0 : i32
    %c0_i32_0 = arith.constant 0 : i32
    %c0_i32_1 = arith.constant 0 : i32
    return %c0_i32, %c0_i32_0 : i32, i32
  }
  func.func @transform_6(%arg0: i32) -> (i32, i32) {
    %c0_i32 = arith.constant 0 : i32
    %c0_i32_0 = arith.constant 0 : i32
    %c0_i32_1 = arith.constant 0 : i32
    return %c0_i32, %c0_i32_0 : i32, i32
  }
  func.func @transform_7(%arg0: i32) -> (i32, i32) {
    %c0_i32 = arith.constant 0 : i32
    %c0_i32_0 = arith.constant 0 : i32
    return %c0_i32, %arg0 : i32, i32
  }
}

</mosaic_0001>

<bundles_post_ra>
// kernel: tpu_custom_call.1
= control target key start
LH: loop header
LB: loop body
LE: loop exit
PB: predicated region body
PF: predicated region fallthrough
CT: control target
= control target key end

     0   :  { %s514_s0 = inlined_call_operand.vmem [shape: f32[8,16], index: 0, kind: input, shape index: {}]   ;;  %s515_s1 = inlined_call_operand.vmem [shape: bf16[32,16], index: 1, kind: input, shape index: {}]   ;;  %s516_s2 = inlined_call_operand.vmem [shape: f32[32,1], index: 2, kind: input, shape index: {}]   ;;  %s517_s3 = inlined_call_operand.vmem [shape: bf16[32,32], index: 3, kind: input, shape index: {}]   ;;  %s518_s4 = inlined_call_operand.vmem [shape: f32[32,1], index: 4, kind: input, shape index: {}]   ;;  %s519_s5 = inlined_call_operand.vmem [shape: bf16[4,32], index: 5, kind: input, shape index: {}]   ;;  %s520_s6 = inlined_call_operand.vmem [shape: f32[4,1], index: 6, kind: input, shape index: {}]   ;;  %s521_s7 = inlined_call_operand.hbm [shape: f32[4,8], index: 7, kind: output, shape index: {}]  }
   0x1   :  { %v28_v0 = vld [vmem:[%s514_s0] sm:$0xff] }
   0x2   :  { %29 = vxpose.xlu0.b32.start.end [1/1] (short) (narrow) %v28_v0, 16 }
   0x3   :  { %12 = vsyncpa [#allocation3], 0  ;;  %v375_v1 = vld [vmem:[%s515_s1] sm:$0xff]   ;;  %vm100_vm0 = vcmask 130048   ;;  %v69_v2 = vld [vmem:[%s516_s2 + $0x18] sm:$0xff]  ;;  %v417_v3 = vmov 0  }
   0x4   :  { %349 = vmatprep.mubr.msk.bf16.mxu0 %vm100_vm0, %v375_v1  ;;  %374 = vset.pattern.permute.xlu1 %v417_v3  ;;  %v66_v4 = vld [vmem:[%s516_s2] sm:$0xff]  ;;  %v67_v5 = vld [vmem:[%s516_s2 + $0x8] sm:$0xff]  ;;  %v168_v6 = vld [vmem:[%s518_s4 + $0x10] sm:$0xff]  ;;  %vm200_vm1 = vcmask 261120   ;;  %v418_v36 = vmov 0.0   ;;  %vm419_vm2 = vmmov 0  }
   0x5   :  { %87 = vperm.xlu1 %374, %v69_v2   ;;  %v169_v7 = vld [vmem:[%s518_s4 + $0x18] sm:$0xff]  ;;  %v166_v8 = vld [vmem:[%s518_s4] sm:$0xff]  ;;  %v167_v9 = vld [vmem:[%s518_s4 + $0x8] sm:$0xff]  ;;  %s420_s25 = smov [#allocation2]   ;;  %vm312_vm3 = vcmask 60416  }
   0x6   :  { %v263_v10 = vld [vmem:[%s520_s6] sm:$0xf]  ;;  %v68_v11 = vld [vmem:[%s516_s2 + $0x10] sm:$0xff]  ;;  %v376_v15 = vld [vmem:[%s515_s1 + $0x8] sm:$0xff]   ;;  %s320_s26 = sshll.u32 %s420_s25, 4  ;;  %s321_s26 = int_to_ptr.vmem [resolvable:$true] %s320_s26 }
   0x7   :  { %v377_v16 = vld [vmem:[%s517_s3] sm:$0xff]   ;;  %v378_v35 = vld [vmem:[%s517_s3 + $0x8] sm:$0xff]   ;;  %s395_s27 = scalar_lea.vmem %s321_s26, 64  ;;  %p400_p1 = scmp.lt.s32.totalorder %s321_s26, %s321_s26 }
   0x8   :  { %357 = vmatprep.mubr.msk.bf16.mxu1 %vm200_vm1, %v377_v16  ;;  %v260_v55 = vld [vmem:[%s519_s5] sm:$0x3]  ;;  %p396_p0 = scmp.ne.s32.totalorder %s321_s26, %s395_s27  ;;  %p401_p2 = scmp.lt.s32.totalorder %s395_s27, %s395_s27 }
   0x9   :  { %72 = vperm.xlu1 %374, %v66_v4  }
   0xa   :  { %p402_p3 = por %p401_p2, %p400_p1 }
   0xc   :  { %p403_p4 = pnand %p402_p3, %p396_p0 }
   0xd   :  { %77 = vperm.xlu1 %374, %v67_v5  }
  0x11   :  { %182 = vperm.xlu1 %374, %v168_v6  }
  0x15   :  { %187 = vperm.xlu1 %374, %v169_v7  }
  0x19   :  { %172 = vperm.xlu1 %374, %v166_v8  }
  0x1d   :  { %177 = vperm.xlu1 %374, %v167_v9  }
  0x21   :  { %266 = vperm.xlu1 %374, %v263_v10  }
  0x2b   :  { %373 = vset.pattern.permute.xlu0 %v417_v3 }
  0x2f   :  { %82 = vperm.xlu0 %373, %v68_v11  }
  0x7e   :  { %v45_v12 = vpop.trf.xlu0 }
  0x80   :  { %v88_v17 = vpop.permute.xlu1 %87 }
  0x82   :  { %v46_v13 = vpop.trf.xlu0 }
  0x83   :  { %v65_v14 = vpack.c.bf16 %v46_v13, %v45_v12 }
  0x84   :  { %v73_v19 = vpop.permute.xlu1 %72 }
  0x85   :  { %347 = vmatprep.subr.bf16.mxu0 %v65_v14 }
  0x86   :  { %348 = vmatpush3.bf16.msra.mxu0 %v65_v14 }
  0x87   :  { %361 = vmatprep.subr.bf16.mxu0 %v418_v36 }
  0x88   :  { %v78_v26 = vpop.permute.xlu1 %77 }
  0x89   :  { %350 = vmatmul.mubr.msk.bf16.vlgmr.msra.gmra.mxu0 %vm100_vm0, %v376_v15 }
  0x8a   :  { %365 = vmatprep.mubr.msk.bf16.mxu0 %vm419_vm2, %v418_v36 }
  0x8c   :  { %v183_v37 = vpop.permute.xlu1 %182 }
  0x90   :  { %v188_v38 = vpop.permute.xlu1 %187 }
  0x94   :  { %v173_v39 = vpop.permute.xlu1 %172 }
  0x98   :  { %v178_v45 = vpop.permute.xlu1 %177 }
  0x9c   :  { %v267_v56 = vpop.permute.xlu1 %266 }
  0xaa   :  { %v83_v18 = vpop.permute.xlu0 %82 }
 0x149   :  { %v351_v20 = vpop.f32.mrf.mxu0 }
 0x14a   :  { %v150_v21 = vadd.f32 %v351_v20, %v83_v18 }
 0x14b   :  { %v141_v22 = vpop.f32.mrf.mxu0 }
 0x14c   :  { %v142_v23 = vadd.f32 %v141_v22, %v73_v19  ;;  %379 = vtanh.f32 %v150_v21 }
 0x14d   :  { %v352_v24 = vpop.f32.mrf.mxu0 }
 0x14e   :  { %v153_v25 = vadd.f32 %v352_v24, %v88_v17 }
 0x14f   :  { %v144_v27 = vpop.f32.mrf.mxu0 }
 0x150   :  { %381 = vtanh.f32 %v153_v25  ;;  %v145_v28 = vadd.f32 %v144_v27, %v78_v26 }
 0x151   :  { %383 = vtanh.f32 %v142_v23 }
 0x152   :  { %385 = vtanh.f32 %v145_v28 }
 0x159   :  { %v380_v29 = vpop.eup %379 }
 0x15d   :  { %v382_v30 = vpop.eup %381 }
 0x15e   :  { %v384_v31 = vpop.eup %383  ;;  %v165_v32 = vpack.c.bf16 %v382_v30, %v380_v29 }
 0x15f   :  { %v386_v33 = vpop.eup %385 }
 0x160   :  { %353 = vmatprep.subr.bf16.mxu1 %v165_v32  ;;  %v164_v34 = vpack.c.bf16 %v386_v33, %v384_v31 }
 0x161   :  { %354 = vmatpush3.bf16.msra.mxu1 %v165_v32 }
 0x162   :  { %355 = vmatprep.subr.bf16.mxu1 %v164_v34 }
 0x165   :  { %356 = vmatpush3.bf16.msra.mxu1 %v164_v34 }
 0x168   :  { %358 = vmatmul.mubr.msk.bf16.vlgmr.msra.gmra.mxu1 %vm200_vm1, %v378_v35 }
 0x228   :  { %v359_v40 = vpop.f32.mrf.mxu1 }
 0x229   :  { %v250_v41 = vadd.f32 %v359_v40, %v183_v37 }
 0x22a   :  { %v241_v42 = vpop.f32.mrf.mxu1 }
 0x22b   :  { %387 = vtanh.f32 %v250_v41  ;;  %v242_v47 = vadd.f32 %v241_v42, %v173_v39 }
 0x22c   :  { %v360_v43 = vpop.f32.mrf.mxu1 }
 0x22d   :  { %v253_v44 = vadd.f32 %v360_v43, %v188_v38 }
 0x22e   :  { %v244_v46 = vpop.f32.mrf.mxu1 }
 0x22f   :  { %389 = vtanh.f32 %v253_v44  ;;  %v245_v48 = vadd.f32 %v244_v46, %v178_v45 }
 0x231   :  { %391 = vtanh.f32 %v245_v48 }
 0x232   :  { %393 = vtanh.f32 %v242_v47 }
 0x238   :  { %v388_v49 = vpop.eup %387 }
 0x23c   :  { %v390_v50 = vpop.eup %389 }
 0x23d   :  { %v262_v51 = vpack.c.bf16 %v390_v50, %v388_v49 }
 0x23e   :  { %v392_v52 = vpop.eup %391 }
 0x23f   :  { %362 = vmatpush3.bf16.msra.mxu0 %v262_v51  ;;  %v394_v53 = vpop.eup %393 }
 0x240   :  { %363 = vmatprep.subr.bf16.mxu0 %v418_v36  ;;  %v261_v54 = vpack.c.bf16 %v392_v52, %v394_v53 }
 0x243   :  { %364 = vmatpush3.bf16.msra.mxu0 %v261_v54 }
 0x246   :  { %366 = vmatmul.mubr.msk.bf16.vlgmr.msra.gmra.mxu0 %vm200_vm1, %v260_v55 }
 0x306   :  { %v306_v57 = vpop.f32.mrf.mxu0 }
 0x307   :  { %v307_v58 = vadd.f32 %v306_v57, %v267_v56 }
 0x308   :  { %v367_v59 = vpop.f32.mrf.mxu0 }
 0x309   :  { %313 = vst.msk [vmem:[#allocation2] sm:$0xf] %vm312_vm3, %v307_v58 }
 0x30a   :  { %v309_v60 = vpop.f32.mrf.mxu0 }
 0x30b   :  { %406 = shalt.err (!%p403_p4)
}
 0x30c   :  { %323 = dma.vmem_to_hbm [thread:$0]  %s321_s26, 64, %s521_s7, [#allocation3]   ;;  %v368_v61 = vpop.f32.mrf.mxu0 }
 0x30d   :  { %415 = dma.done.wait [#allocation3], 64  }
 0x30e   :  { %416 = vsyncadd [#allocation3], 4294967232 }
 0x30f   :  { %327 = vsyncpa [#allocation3], 1 }

</bundles_post_ra>
